<compile_context>
chip_gen: v5e
topology: v5e:2x2
jax: 0.10.0
libtpu: 0.0.40
codegen_flags: <defaults>
</compile_context>

<pallas_src>
import jax
import jax.numpy as jnp
from jax.experimental import pallas as pl
from jax.experimental.pallas import tpu as pltpu


def _round_up(x, m):
    return ((x + m - 1) // m) * m


def _patch_proj_kernel(x_ref, w_ref, b_ref, o_ref):
    # x_ref: (TM, 2K)  w_ref: (2K, 2N)  b_ref: (1, 2N)  o_ref: (TM, 2N)
    acc = jnp.dot(x_ref[...], w_ref[...], preferred_element_type=jnp.float32)
    o_ref[...] = (acc + b_ref[...]).astype(o_ref.dtype)


def patch_projection(patches, weight, bias, tm=4096, out_dtype=None):
    """patches: (B, C, NP, H, W); weight: (N, K) PyTorch-style; bias: (N,)."""
    B, C, NP, H, W = patches.shape
    assert C == 1, "torch .view(B, NP, -1) parity requires C == 1"
    K = C * H * W
    N = weight.shape[0]
    assert weight.shape == (N, K)
    assert bias.shape == (N,)

    dtype = patches.dtype
    out_dtype = dtype if out_dtype is None else out_dtype
    M = B * NP

    # --- wrapper glue: only free (contiguous, row-major) reshapes -----------
    x2d = patches.reshape(M, K)  # row-major flatten == torch .view for C == 1

    M2 = M // 2  # folded rows (pairs of patches); odd leftover handled below
    if M2 == 0:
        # Degenerate single-patch input: no kernel needed.
        out = (x2d.astype(jnp.float32) @ weight.T.astype(jnp.float32)
               + bias.astype(jnp.float32)).astype(out_dtype)
        return out.reshape(B, NP, N)

    x_main = x2d if 2 * M2 == M else x2d[: 2 * M2]
    x_fold = x_main.reshape(M2, 2 * K)  # row i = [patch_{2i}, patch_{2i+1}]

    # Block-diagonal weight: [x_a, x_b] @ W2 = [x_a @ Wt, x_b @ Wt].
    # Note: cast to patches.dtype (documented down-cast if patches are bf16).
    w_t = weight.T.astype(dtype)                            # (K, N)
    w2 = jnp.zeros((2 * K, 2 * N), dtype=w_t.dtype)
    w2 = w2.at[:K, :N].set(w_t).at[K:, N:].set(w_t)         # (2K, 2N)
    b2 = jnp.concatenate([bias, bias]).reshape(1, 2 * N).astype(jnp.float32)

    # --- tile sizing ---------------------------------------------------------
    # (tm, 98) input tile occupies tm*128*4 B in VMEM (lane padding!), output
    # tile tm*128*4 B; tm=4096 double-buffered ~= 8 MiB (safe on v5e/v6e/v7x).
    tm = min(tm, _round_up(M2, 8))               # shrink for small inputs
    if M2 > 8:                                   # >=2 grid steps -> both v7x TCs work
        tm = min(tm, _round_up(pl.cdiv(M2, 2), 8))
    tm = max(8, (tm // 8) * 8)                   # keep TM a multiple of 8

    grid = (pl.cdiv(M2, tm),)                    # ragged last tile masked by Pallas

    itemsize = jnp.dtype(dtype).itemsize
    out_itemsize = jnp.dtype(out_dtype).itemsize
    cost = pl.CostEstimate(
        flops=2 * (2 * M2) * K * N,
        bytes_accessed=(M2 * 2 * K) * itemsize          # streamed input rows
        + (2 * K) * (2 * N) * itemsize                  # VMEM-resident folded weight
        + (M2 * 2 * N) * out_itemsize,                  # output rows
        transcendentals=0,
    )

    out = pl.pallas_call(
        _patch_proj_kernel,
        out_shape=jax.ShapeDtypeStruct((M2, 2 * N), out_dtype),
        grid=grid,
        in_specs=[
            pl.BlockSpec((tm, 2 * K), lambda i: (i, 0)),     # streamed rows
            pl.BlockSpec((2 * K, 2 * N), lambda i: (0, 0)),  # resident weight
            pl.BlockSpec((1, 2 * N), lambda i: (0, 0)),      # resident bias
        ],
        out_specs=pl.BlockSpec((tm, 2 * N), lambda i: (i, 0)),
        compiler_params=pltpu.CompilerParams(
            dimension_semantics=("parallel",)),
        cost_estimate=cost,
    )(x_fold, w2, b2)

    # Unfold: (M2, 2N) row-major == (2*M2, N). Free reshape, no slicing.
    out = out.reshape(2 * M2, N)

    if 2 * M2 != M:
        # Odd number of patches: last one computed in plain JAX (rare path).
        last = (x2d[M - 1:].astype(jnp.float32) @ weight.T.astype(jnp.float32)
                + bias.astype(jnp.float32)).astype(out_dtype)
        out = jnp.concatenate([out, last], axis=0)

    return out.reshape(B, NP, N)


if __name__ == "__main__":
    # Linear(7*7 -> 64) implies C*H*W == 49, i.e. C=1, H=W=7.
    N_OUT, K_IN = 64, 7 * 7
    key = jax.random.PRNGKey(0)
    k_x, k_w, k_b = jax.random.split(key, 3)

    # Deterministic synthetic parameters (not a checkpoint load).
    weight = jax.random.normal(k_w, (N_OUT, K_IN), dtype=jnp.float32) * 0.02
    bias = jax.random.normal(k_b, (N_OUT,), dtype=jnp.float32) * 0.02

    # Case 1: canonical small shape (even patch count).
    B, C, NP, H, W = 2, 1, 8, 7, 7
    patches = jax.random.normal(k_x, (B, C, NP, H, W), dtype=jnp.float32)
    out = jax.block_until_ready(patch_projection(patches, weight, bias))
    ref = patches.reshape(B, NP, -1) @ weight.T + bias
    assert out.shape == (B, NP, N_OUT)
    assert jnp.allclose(out, ref, atol=1e-5, rtol=1e-5)

    # Case 2: odd patch count + ragged tile path.
    B2, NP2 = 3, 11
    patches2 = jax.random.normal(k_x, (B2, 1, NP2, H, W), dtype=jnp.float32)
    out2 = jax.block_until_ready(patch_projection(patches2, weight, bias))
    ref2 = patches2.reshape(B2, NP2, -1) @ weight.T + bias
    assert out2.shape == (B2, NP2, N_OUT)
    assert jnp.allclose(out2, ref2, atol=1e-5, rtol=1e-5)

    print("KERNEL_OK")
</pallas_src>

<mosaic_0001>
module attributes {stable_mosaic.version = 11 : i64} {
  func.func @_patch_proj_kernel(%arg0: i32, %arg1: memref<8x98xf32, #tpu.memory_space<vmem>>, %arg2: memref<98x128xf32, #tpu.memory_space<vmem>>, %arg3: memref<1x128xf32, #tpu.memory_space<vmem>>, %arg4: memref<8x128xf32, #tpu.memory_space<vmem>>) attributes {dimension_semantics = [#tpu.dimension_semantics<parallel>], iteration_bounds = array<i64: 1>, scalar_prefetch = 0 : i64, scratch_operands = 0 : i64, tpu.core_type = #tpu.core_type<tc>, window_params = [{transform_indices = @transform_0, window_bounds = array<i64: 8, 98>}, {pipeline_mode = #tpu.pipeline_mode<synchronous>, transform_indices = @transform_1, window_bounds = array<i64: 98, 128>}, {pipeline_mode = #tpu.pipeline_mode<synchronous>, transform_indices = @transform_2, window_bounds = array<i64: 1, 128>}, {transform_indices = @transform_3, window_bounds = array<i64: 8, 128>}]} {
    %c0 = arith.constant 0 : index
    %c0_0 = arith.constant 0 : index
    %0 = vector.load %arg1[%c0, %c0_0] : memref<8x98xf32, #tpu.memory_space<vmem>>, vector<8x98xf32>
    %c0_1 = arith.constant 0 : index
    %c0_2 = arith.constant 0 : index
    %1 = vector.load %arg2[%c0_1, %c0_2] : memref<98x128xf32, #tpu.memory_space<vmem>>, vector<98x128xf32>
    %cst = arith.constant dense<0.000000e+00> : vector<8x128xf32>
    %2 = tpu.matmul %0, %1, %cst {dimension_numbers = #tpu.dot_dimension_numbers<[1], [0], [0], [1], [0, 0, 1, 1], [], []>} : vector<8x98xf32>, vector<98x128xf32>, vector<8x128xf32> -> vector<8x128xf32>
    %c0_3 = arith.constant 0 : index
    %c0_4 = arith.constant 0 : index
    %3 = vector.load %arg3[%c0_3, %c0_4] : memref<1x128xf32, #tpu.memory_space<vmem>>, vector<1x128xf32>
    %4 = vector.broadcast %3 : vector<1x128xf32> to vector<8x128xf32>
    %5 = arith.addf %2, %4 : vector<8x128xf32>
    %c0_5 = arith.constant 0 : index
    %c0_6 = arith.constant 0 : index
    %6 = vector.load %arg4[%c0_5, %c0_6] : memref<8x128xf32, #tpu.memory_space<vmem>>, vector<8x128xf32>
    tpu.vector_store %arg4[%c0_5, %c0_6], %5 {strides = array<i32>} : memref<8x128xf32, #tpu.memory_space<vmem>>, vector<8x128xf32>,
    return
  }
  func.func @transform_0(%arg0: i32) -> (i32, i32) {
    %c0_i32 = arith.constant 0 : i32
    %c0_i32_0 = arith.constant 0 : i32
    return %arg0, %c0_i32 : i32, i32
  }
  func.func @transform_1(%arg0: i32) -> (i32, i32) {
    %c0_i32 = arith.constant 0 : i32
    %c0_i32_0 = arith.constant 0 : i32
    %c0_i32_1 = arith.constant 0 : i32
    return %c0_i32, %c0_i32_0 : i32, i32
  }
  func.func @transform_2(%arg0: i32) -> (i32, i32) {
    %c0_i32 = arith.constant 0 : i32
    %c0_i32_0 = arith.constant 0 : i32
    %c0_i32_1 = arith.constant 0 : i32
    return %c0_i32, %c0_i32_0 : i32, i32
  }
  func.func @transform_3(%arg0: i32) -> (i32, i32) {
    %c0_i32 = arith.constant 0 : i32
    %c0_i32_0 = arith.constant 0 : i32
    return %arg0, %c0_i32 : i32, i32
  }
}

</mosaic_0001>

<bundles_post_ra>
// kernel: tpu_custom_call.1
= control target key start
LH: loop header
LB: loop body
LE: loop exit
PB: predicated region body
PF: predicated region fallthrough
CT: control target
= control target key end

     0   :  { %8 = vsyncpa [#allocation3], 0  ;;  %s233_s0 = inlined_call_operand.hbm [shape: f32[8,98], index: 0, kind: input, shape index: {}]   ;;  %s234_s1 = inlined_call_operand.hbm [shape: f32[98,128], index: 1, kind: input, shape index: {}]   ;;  %s235_s2 = inlined_call_operand.vmem [shape: f32[1,128], index: 2, kind: input, shape index: {}]   ;;  %s236_s3 = inlined_call_operand.hbm [shape: f32[8,128], index: 3, kind: output, shape index: {}]  }
   0x1   :  { %9 = vsyncpa [#allocation6], 0 }
   0x2   :  { %10 = vsyncpa [#allocation4], 0  ;;  %s16_s14 = sshll.u32 %s233_s0, 4  ;;  %s196_s15 = smov [#allocation2]   ;;  %s17_s14 = int_to_ptr.hbm [resolvable:$true] %s16_s14 }
   0x3   :  { %s18_s16 = sshll.u32 %s196_s15, 4  ;;  %s26_s19 = sshll.u32 %s234_s1, 4  ;;  %s19_s16 = int_to_ptr.vmem [resolvable:$true] %s18_s16  ;;  %s27_s19 = int_to_ptr.hbm [resolvable:$true] %s26_s19 }
   0x4   :  { %21 = dma.hbm_to_vmem [thread:$0]  %s17_s14, 128, %s19_s16, [#allocation3]  }
   0x5   :  { %s197_s20 = smov [#allocation5]   ;;  %s198_s22 = smov 128  }
   0x6   :  { %s28_s21 = sshll.u32 %s197_s20, 4  ;;  %s199_s23 = smov 8   ;;  %s29_s21 = int_to_ptr.vmem [resolvable:$true] %s28_s21 }
   0x7   :  { %34 = dma.hbm_to_vmem [thread:$0]  %s27_s19, 1664, %s29_s21, [#allocation6], %s198_s22, %s198_s22, %s199_s23  }
   0x8   :  { %190 = dma.done.wait [#allocation3], 128  }
   0x9   :  { %191 = vsyncadd [#allocation3], 4294967168 }
   0xa   :  { %192 = dma.done.wait [#allocation6], 1664  }
   0xb   :  { %193 = vsyncadd [#allocation6], 4294965632  ;;  %vm67_vm0 = vcmask 1041408   ;;  %v58_v0 = vld [vmem:[#allocation5 + $0x60] sm:$0x3]  ;;  %v57_v1 = vld [vmem:[#allocation5 + $0x58] sm:$0xff] }
   0xc   :  { %110 = vmatpush.msk.msra.mxu0 %vm67_vm0, %v58_v0  ;;  %v56_v2 = vld [vmem:[#allocation5 + $0x50] sm:$0xff]  ;;  %v55_v3 = vld [vmem:[#allocation5 + $0x48] sm:$0xff]  ;;  %v54_v4 = vld [vmem:[#allocation5 + $0x40] sm:$0xff]  ;;  %vm63_vm1 = vcmask 801792   ;;  %s200_s24 = smov [#allocation7]   ;;  %s99_s28 = sshll.u32 %s236_s3, 4  ;;  %s100_s28 = int_to_ptr.hbm [resolvable:$true] %s99_s28 }
   0xd   :  { %v53_v5 = vld [vmem:[#allocation5 + $0x38] sm:$0xff]  ;;  %v52_v6 = vld [vmem:[#allocation5 + $0x30] sm:$0xff]  ;;  %v51_v7 = vld [vmem:[#allocation5 + $0x28] sm:$0xff]  ;;  %s97_s25 = sshll.u32 %s200_s24, 4  ;;  %s98_s25 = int_to_ptr.vmem [resolvable:$true] %s97_s25 }
   0xe   :  { %75 = vmatpush.msra.mxu0 %v57_v1  ;;  %v50_v8 = vld [vmem:[#allocation5 + $0x20] sm:$0xff]  ;;  %v49_v9 = vld [vmem:[#allocation5 + $0x18] sm:$0xff]  ;;  %v48_v10 = vld [vmem:[#allocation5 + $0x10] sm:$0xff] }
   0xf   :  { %v47_v11 = vld [vmem:[#allocation5 + $0x8] sm:$0xff]  ;;  %v46_v12 = vld [vmem:[#allocation5] sm:$0xff]  ;;  %v45_v13 = vld [vmem:[#allocation2] sm:$0xff] }
  0x10   :  { %76 = vmatpush.msra.mxu0 %v56_v2  ;;  %v117_v14 = vld [vmem:[%s235_s2] ss:$0 sm:$0xff] }
  0x12   :  { %77 = vmatpush.msra.mxu0 %v55_v3 }
  0x14   :  { %78 = vmatpush.msra.mxu0 %v54_v4 }
  0x16   :  { %79 = vmatpush.msra.mxu0 %v53_v5 }
  0x18   :  { %80 = vmatpush.msra.mxu0 %v52_v6 }
  0x1a   :  { %81 = vmatpush.msra.mxu0 %v51_v7 }
  0x1c   :  { %82 = vmatpush.msra.mxu0 %v50_v8 }
  0x1e   :  { %83 = vmatpush.msra.mxu0 %v49_v9 }
  0x20   :  { %84 = vmatpush.msra.mxu0 %v48_v10 }
  0x22   :  { %85 = vmatpush.msra.mxu0 %v47_v11 }
  0x24   :  { %86 = vmatpush.msra.mxu0 %v46_v12 }
  0x25   :  { %111 = vmatmul.msk.f32.vlgmr.msra.gmra.mxu0 %vm63_vm1, %v45_v13 }
  0xa2   :  { %v88_v15 = vpop.f32.mrf.mxu0 }
  0xa3   :  { %v89_v16 = vadd.f32 %v117_v14, %v88_v15 }
  0xa5   :  { %91 = vst [vmem:[#allocation7] sm:$0xff] %v89_v16 }
  0xa6   :  { %102 = dma.vmem_to_hbm [thread:$0]  %s98_s25, 128, %s100_s28, [#allocation4]  }
  0xa7   :  { %194 = dma.done.wait [#allocation4], 128  }
  0xa8   :  { %195 = vsyncadd [#allocation4], 4294967168 }
  0xa9   :  { %107 = vsyncpa [#allocation3], 1 }
  0xaa   :  { %108 = vsyncpa [#allocation6], 1 }
  0xab   :  { %109 = vsyncpa [#allocation4], 1 }

</bundles_post_ra>
